<compile_context>
chip_gen: v6e
topology: v6e:2x2x1
jax: 0.10.0
libtpu: 0.0.40
codegen_flags: <defaults>
</compile_context>

<pallas_src>
import functools

import numpy as np
import jax
import jax.numpy as jnp
from jax.experimental import pallas as pl
from jax.experimental.pallas import tpu as pltpu

MAP_DEPTH = 8
LRELU_SLOPE = 0.2
IN_EPS = 1e-5     # nn.InstanceNorm2d default eps
PN_EPS = 1e-8     # PixelNorm eps

IN_CH = [512, 512, 512, 512, 512, 256, 128, 64, 32]
OUT_CH = [512, 512, 512, 512, 256, 128, 64, 32, 16]


def _cp(sem):
    return pltpu.CompilerParams(dimension_semantics=sem,
                                vmem_limit_bytes=32 * 1024 * 1024)


def _leaky(x):
    return jnp.where(x >= 0, x, LRELU_SLOPE * x)


# ----------------------------- mapping network ------------------------------
def _mapping_kernel(z_ref, w_ref, b_ref, o_ref, x_scr):
    # grid=(MAP_DEPTH,): layer-l weights stream into VMEM while layer-(l-1) computes.
    l = pl.program_id(0)

    @pl.when(l == 0)
    def _():
        zf = z_ref[...].astype(jnp.float32)
        # PixelNorm over the feature (lane) dimension.
        x_scr[...] = zf * jax.lax.rsqrt(jnp.mean(zf * zf, axis=1, keepdims=True) + PN_EPS)

    x = x_scr[...]
    y = jnp.dot(x.astype(jnp.bfloat16), w_ref[0],
                preferred_element_type=jnp.float32) + b_ref[0]
    y = _leaky(y)
    x_scr[...] = y
    o_ref[...] = y.astype(o_ref.dtype)


def run_mapping(z, w_stack, b_stack):
    B, Z = z.shape
    D = w_stack.shape[0]
    return pl.pallas_call(
        _mapping_kernel,
        out_shape=jax.ShapeDtypeStruct((B, Z), jnp.float32),
        grid=(D,),
        in_specs=[
            pl.BlockSpec((B, Z), lambda l: (0, 0)),
            pl.BlockSpec((1, Z, Z), lambda l: (l, 0, 0)),
            pl.BlockSpec((1, 1, Z), lambda l: (l, 0, 0)),
        ],
        out_specs=pl.BlockSpec((B, Z), lambda l: (0, 0)),
        scratch_shapes=[pltpu.VMEM((B, Z), jnp.float32)],
        compiler_params=_cp(("arbitrary",)),
    )(z, w_stack, b_stack)


# ----------------------- fused epilogue (noise->IN->AdaIN->LeakyReLU) --------
def _noise_in_adain_lrelu(acc, noise, nw, style_row, wsg, wsb, bsg, bsb):
    # acc: (HW, C) f32 conv output (bias included); noise: (HW, 1) f32.
    acc = acc + noise * nw
    mu = jnp.mean(acc, axis=0, keepdims=True)
    var = jnp.mean((acc - mu) * (acc - mu), axis=0, keepdims=True)   # biased variance
    xn = (acc - mu) * jax.lax.rsqrt(var + IN_EPS)
    gamma = jnp.dot(style_row, wsg, preferred_element_type=jnp.float32) + bsg
    beta = jnp.dot(style_row, wsb, preferred_element_type=jnp.float32) + bsb
    return _leaky(gamma * xn + beta)


# --------------------- styled 3x3 conv (in-kernel shifted windows) ----------
def _styled_conv3x3_kernel(*refs, fuse_rgb):
    # Input xpad: (1, Ho+2, Wo+2, Cin) bf16, already zero-padded (wrapper glue).
    if fuse_rgb:
        (xp_ref, w_ref, b_ref, nz_ref, nw_ref, st_ref,
         wsg_ref, wsb_ref, bsg_ref, bsb_ref,
         wr_ref, br_ref, o_ref, rgb_ref) = refs
    else:
        (xp_ref, w_ref, b_ref, nz_ref, nw_ref, st_ref,
         wsg_ref, wsb_ref, bsg_ref, bsb_ref, o_ref) = refs

    _, hp2, wp2, cin = xp_ref.shape
    ho, wo = hp2 - 2, wp2 - 2
    cout = o_ref.shape[2]

    xpad = xp_ref[0].astype(jnp.float32)
    acc = jnp.zeros((ho * wo, cout), jnp.float32)
    for dy in range(3):
        for dx in range(3):
            win = xpad[dy:dy + ho, dx:dx + wo, :].reshape(ho * wo, cin)
            acc = acc + jnp.dot(win.astype(jnp.bfloat16), w_ref[dy * 3 + dx],
                                preferred_element_type=jnp.float32)
    acc = acc + b_ref[...]

    out = _noise_in_adain_lrelu(acc, nz_ref[0], nw_ref[...], st_ref[0],
                                wsg_ref[...], wsb_ref[...], bsg_ref[...], bsb_ref[...])
    o_ref[0] = out.astype(o_ref.dtype)

    if fuse_rgb:
        rgb = jnp.dot(out.astype(jnp.bfloat16), wr_ref[...],
                      preferred_element_type=jnp.float32) + br_ref[...]
        rgb_ref[0] = rgb.astype(rgb_ref.dtype)


def run_styled_conv(xpad4, w9, b, noise_flat, nw, style3, wsg, wsb, bsg, bsb,
                    wrgb=None, brgb=None):
    B, hp2, wp2, Cin = xpad4.shape
    Ho, Wo = hp2 - 2, wp2 - 2
    HW = Ho * Wo
    Cout = w9.shape[2]
    Z = style3.shape[2]
    fuse_rgb = wrgb is not None

    in_specs = [
        pl.BlockSpec((1, hp2, wp2, Cin), lambda n: (n, 0, 0, 0)),
        pl.BlockSpec((9, Cin, Cout), lambda n: (0, 0, 0)),
        pl.BlockSpec((1, Cout), lambda n: (0, 0)),
        pl.BlockSpec((1, HW, 1), lambda n: (n, 0, 0)),
        pl.BlockSpec((1, Cout), lambda n: (0, 0)),
        pl.BlockSpec((1, 1, Z), lambda n: (n, 0, 0)),
        pl.BlockSpec((Z, Cout), lambda n: (0, 0)),
        pl.BlockSpec((Z, Cout), lambda n: (0, 0)),
        pl.BlockSpec((1, Cout), lambda n: (0, 0)),
        pl.BlockSpec((1, Cout), lambda n: (0, 0)),
    ]
    args = [xpad4, w9, b, noise_flat, nw, style3, wsg, wsb, bsg, bsb]
    out_shape = jax.ShapeDtypeStruct((B, HW, Cout), jnp.bfloat16)
    out_specs = pl.BlockSpec((1, HW, Cout), lambda n: (n, 0, 0))
    if fuse_rgb:
        in_specs += [pl.BlockSpec((Cout, 128), lambda n: (0, 0)),
                     pl.BlockSpec((1, 128), lambda n: (0, 0))]
        args += [wrgb, brgb]
        out_shape = (out_shape, jax.ShapeDtypeStruct((B, HW, 128), jnp.float32))
        out_specs = (out_specs, pl.BlockSpec((1, HW, 128), lambda n: (n, 0, 0)))

    return pl.pallas_call(
        functools.partial(_styled_conv3x3_kernel, fuse_rgb=fuse_rgb),
        out_shape=out_shape,
        grid=(B,),
        in_specs=in_specs,
        out_specs=out_specs,
        compiler_params=_cp(("parallel",)),
    )(*args)


# ----- styled 3x3 conv with the H-half of the bilinear 2x upsample fused -----
def _styled_conv3x3_up_kernel(*refs, emit_skip):
    # Input xw: (1, H, 2W+2, Cin) bf16 = W-upsampled + W-zero-padded activation.
    # The H-direction 2-tap bilinear upsample, H zero-pad, 3x3 conv and the fused
    # epilogue all happen in VMEM; the full-res upsampled map never touches HBM.
    if emit_skip:
        (xw_ref, w_ref, b_ref, nz_ref, nw_ref, st_ref,
         wsg_ref, wsb_ref, bsg_ref, bsb_ref,
         wr_ref, br_ref, o_ref, skip_ref) = refs
    else:
        (xw_ref, w_ref, b_ref, nz_ref, nw_ref, st_ref,
         wsg_ref, wsb_ref, bsg_ref, bsb_ref, o_ref) = refs

    _, h, wp2, cin = xw_ref.shape
    ho, wo = 2 * h, wp2 - 2
    cout = o_ref.shape[2]

    x = xw_ref[0].astype(jnp.float32)                       # (h, 2W+2, cin)
    # bilinear 2x along H (align_corners=False): out[2i]=.75x[i]+.25x[i-1] (clamped),
    #                                            out[2i+1]=.75x[i]+.25x[i+1] (clamped)
    xu = jnp.concatenate([x[:1], x[:-1]], axis=0)
    xd = jnp.concatenate([x[1:], x[-1:]], axis=0)
    ev = 0.75 * x + 0.25 * xu
    od = 0.75 * x + 0.25 * xd
    up = jnp.stack([ev, od], axis=1).reshape(ho, wp2, cin)  # (2H, 2W+2, cin)

    zrow = jnp.zeros((1, wp2, cin), jnp.float32)
    upad = jnp.concatenate([zrow, up, zrow], axis=0)        # (2H+2, 2W+2, cin)

    acc = jnp.zeros((ho * wo, cout), jnp.float32)
    for dy in range(3):
        for dx in range(3):
            win = upad[dy:dy + ho, dx:dx + wo, :].reshape(ho * wo, cin)
            acc = acc + jnp.dot(win.astype(jnp.bfloat16), w_ref[dy * 3 + dx],
                                preferred_element_type=jnp.float32)
    acc = acc + b_ref[...]

    out = _noise_in_adain_lrelu(acc, nz_ref[0], nw_ref[...], st_ref[0],
                                wsg_ref[...], wsb_ref[...], bsg_ref[...], bsb_ref[...])
    o_ref[0] = out.astype(o_ref.dtype)

    if emit_skip:
        # skip_rgb = to_rgb[i-1](upsampled map) for the progressive-growing alpha blend.
        up_in = up[:, 1:wp2 - 1, :].reshape(ho * wo, cin)
        skip = jnp.dot(up_in.astype(jnp.bfloat16), wr_ref[...],
                       preferred_element_type=jnp.float32) + br_ref[...]
        skip_ref[0] = skip.astype(skip_ref.dtype)


def run_styled_conv_up(xw4, w9, b, noise_flat, nw, style3, wsg, wsb, bsg, bsb,
                       wrgb_prev=None, brgb_prev=None):
    B, H, Wp2, Cin = xw4.shape
    Ho, Wo = 2 * H, Wp2 - 2
    HW = Ho * Wo
    Cout = w9.shape[2]
    Z = style3.shape[2]
    emit_skip = wrgb_prev is not None

    in_specs = [
        pl.BlockSpec((1, H, Wp2, Cin), lambda n: (n, 0, 0, 0)),
        pl.BlockSpec((9, Cin, Cout), lambda n: (0, 0, 0)),
        pl.BlockSpec((1, Cout), lambda n: (0, 0)),
        pl.BlockSpec((1, HW, 1), lambda n: (n, 0, 0)),
        pl.BlockSpec((1, Cout), lambda n: (0, 0)),
        pl.BlockSpec((1, 1, Z), lambda n: (n, 0, 0)),
        pl.BlockSpec((Z, Cout), lambda n: (0, 0)),
        pl.BlockSpec((Z, Cout), lambda n: (0, 0)),
        pl.BlockSpec((1, Cout), lambda n: (0, 0)),
        pl.BlockSpec((1, Cout), lambda n: (0, 0)),
    ]
    args = [xw4, w9, b, noise_flat, nw, style3, wsg, wsb, bsg, bsb]
    out_shape = jax.ShapeDtypeStruct((B, HW, Cout), jnp.bfloat16)
    out_specs = pl.BlockSpec((1, HW, Cout), lambda n: (n, 0, 0))
    if emit_skip:
        in_specs += [pl.BlockSpec((Cin, 128), lambda n: (0, 0)),
                     pl.BlockSpec((1, 128), lambda n: (0, 0))]
        args += [wrgb_prev, brgb_prev]
        out_shape = (out_shape, jax.ShapeDtypeStruct((B, HW, 128), jnp.float32))
        out_specs = (out_specs, pl.BlockSpec((1, HW, 128), lambda n: (n, 0, 0)))

    return pl.pallas_call(
        functools.partial(_styled_conv3x3_up_kernel, emit_skip=emit_skip),
        out_shape=out_shape,
        grid=(B,),
        in_specs=in_specs,
        out_specs=out_specs,
        compiler_params=_cp(("parallel",)),
    )(*args)


# ---------------- tiny 4x4 stage: im2col formulation (W=4 < sublane tile) ----
def _styled_conv_im2col_kernel(*refs, fuse_rgb):
    if fuse_rgb:
        (xc_ref, w_ref, b_ref, nz_ref, nw_ref, st_ref,
         wsg_ref, wsb_ref, bsg_ref, bsb_ref,
         wr_ref, br_ref, o_ref, rgb_ref) = refs
    else:
        (xc_ref, w_ref, b_ref, nz_ref, nw_ref, st_ref,
         wsg_ref, wsb_ref, bsg_ref, bsb_ref, o_ref) = refs

    acc = jnp.dot(xc_ref[0], w_ref[...], preferred_element_type=jnp.float32) + b_ref[...]
    out = _noise_in_adain_lrelu(acc, nz_ref[0], nw_ref[...], st_ref[0],
                                wsg_ref[...], wsb_ref[...], bsg_ref[...], bsb_ref[...])
    o_ref[0] = out.astype(o_ref.dtype)
    if fuse_rgb:
        rgb = jnp.dot(out.astype(jnp.bfloat16), wr_ref[...],
                      preferred_element_type=jnp.float32) + br_ref[...]
        rgb_ref[0] = rgb.astype(rgb_ref.dtype)


def run_styled_conv_im2col(x_cols, w, b, noise_flat, nw, style3, wsg, wsb, bsg, bsb,
                           wrgb=None, brgb=None):
    B, HW, K = x_cols.shape
    Cout = w.shape[1]
    Z = style3.shape[2]
    fuse_rgb = wrgb is not None

    in_specs = [
        pl.BlockSpec((1, HW, K), lambda n: (n, 0, 0)),
        pl.BlockSpec((K, Cout), lambda n: (0, 0)),
        pl.BlockSpec((1, Cout), lambda n: (0, 0)),
        pl.BlockSpec((1, HW, 1), lambda n: (n, 0, 0)),
        pl.BlockSpec((1, Cout), lambda n: (0, 0)),
        pl.BlockSpec((1, 1, Z), lambda n: (n, 0, 0)),
        pl.BlockSpec((Z, Cout), lambda n: (0, 0)),
        pl.BlockSpec((Z, Cout), lambda n: (0, 0)),
        pl.BlockSpec((1, Cout), lambda n: (0, 0)),
        pl.BlockSpec((1, Cout), lambda n: (0, 0)),
    ]
    args = [x_cols, w, b, noise_flat, nw, style3, wsg, wsb, bsg, bsb]
    out_shape = jax.ShapeDtypeStruct((B, HW, Cout), jnp.bfloat16)
    out_specs = pl.BlockSpec((1, HW, Cout), lambda n: (n, 0, 0))
    if fuse_rgb:
        in_specs += [pl.BlockSpec((Cout, 128), lambda n: (0, 0)),
                     pl.BlockSpec((1, 128), lambda n: (0, 0))]
        args += [wrgb, brgb]
        out_shape = (out_shape, jax.ShapeDtypeStruct((B, HW, 128), jnp.float32))
        out_specs = (out_specs, pl.BlockSpec((1, HW, 128), lambda n: (n, 0, 0)))

    return pl.pallas_call(
        functools.partial(_styled_conv_im2col_kernel, fuse_rgb=fuse_rgb),
        out_shape=out_shape,
        grid=(B,),
        in_specs=in_specs,
        out_specs=out_specs,
        compiler_params=_cp(("parallel",)),
    )(*args)


# ----------------------------- initial (constant) block ----------------------
def _initial_block_kernel(const_ref, nz_ref, nw_ref, st_ref,
                          wsg_ref, wsb_ref, bsg_ref, bsb_ref, o_ref):
    acc = const_ref[0].astype(jnp.float32)
    out = _noise_in_adain_lrelu(acc, nz_ref[0], nw_ref[...], st_ref[0],
                                wsg_ref[...], wsb_ref[...], bsg_ref[...], bsb_ref[...])
    o_ref[0] = out.astype(o_ref.dtype)


def run_initial_block(const3, noise_flat, nw, style3, wsg, wsb, bsg, bsb):
    B = noise_flat.shape[0]
    _, HW, C = const3.shape
    Z = style3.shape[2]
    return pl.pallas_call(
        _initial_block_kernel,
        out_shape=jax.ShapeDtypeStruct((B, HW, C), jnp.bfloat16),
        grid=(B,),
        in_specs=[
            pl.BlockSpec((1, HW, C), lambda n: (0, 0, 0)),
            pl.BlockSpec((1, HW, 1), lambda n: (n, 0, 0)),
            pl.BlockSpec((1, C), lambda n: (0, 0)),
            pl.BlockSpec((1, 1, Z), lambda n: (n, 0, 0)),
            pl.BlockSpec((Z, C), lambda n: (0, 0)),
            pl.BlockSpec((Z, C), lambda n: (0, 0)),
            pl.BlockSpec((1, C), lambda n: (0, 0)),
            pl.BlockSpec((1, C), lambda n: (0, 0)),
        ],
        out_specs=pl.BlockSpec((1, HW, C), lambda n: (n, 0, 0)),
        compiler_params=_cp(("parallel",)),
    )(const3, noise_flat, nw, style3, wsg, wsb, bsg, bsb)


# ------------------------------- wrapper glue --------------------------------
def upsample_w_and_pad(x4):
    """(B,H,W,C) -> (B,H,2W+2,C): bilinear 2x along W (align_corners=False) plus the
    3x3-conv zero padding along W.  The H half of the upsample is fused in-kernel."""
    x = x4.astype(jnp.float32)
    xl = jnp.concatenate([x[:, :, :1], x[:, :, :-1]], axis=2)
    xr = jnp.concatenate([x[:, :, 1:], x[:, :, -1:]], axis=2)
    ev = 0.75 * x + 0.25 * xl
    od = 0.75 * x + 0.25 * xr
    B, H, W, C = x.shape
    up = jnp.stack([ev, od], axis=3).reshape(B, H, 2 * W, C)
    up = jnp.pad(up, ((0, 0), (0, 0), (1, 1), (0, 0)))
    return up.astype(jnp.bfloat16)


def pad_hw(x4):
    return jnp.pad(x4, ((0, 0), (1, 1), (1, 1), (0, 0)))


def im2col3x3(x4):
    """(B,H,W,C) -> (B,H*W,9C); used only for the tiny 4x4 stage."""
    B, H, W, C = x4.shape
    xp = jnp.pad(x4, ((0, 0), (1, 1), (1, 1), (0, 0)))
    cols = [xp[:, dy:dy + H, dx:dx + W, :].reshape(B, H * W, C)
            for dy in range(3) for dx in range(3)]
    return jnp.concatenate(cols, axis=-1)


def init_generator_params(key, zdim=512, max_step=0):
    ks = iter(jax.random.split(key, 16 * (max_step + 1) + 8))
    p = {}
    # Mapping: equalized-lr scale sqrt(2/fan_in) folded into stored (bf16) weights.
    p["map_w"] = (jax.random.normal(next(ks), (MAP_DEPTH, zdim, zdim), jnp.float32)
                  * np.sqrt(2.0 / zdim)).astype(jnp.bfloat16)
    p["map_b"] = jnp.zeros((MAP_DEPTH, 1, zdim), jnp.float32)

    blocks = []
    for i in range(max_step + 1):
        cin, cout = IN_CH[i], OUT_CH[i]
        blk = {}
        if i == 0:
            blk["const"] = jax.random.normal(next(ks), (1, 16, cin), jnp.float32)
        else:
            blk["w1"] = (jax.random.normal(next(ks), (9, cin, cout), jnp.float32)
                         * np.sqrt(2.0 / (9 * cin))).astype(jnp.bfloat16)
            blk["b1"] = jnp.zeros((1, cout), jnp.float32)
        blk["nw1"] = 0.1 * jax.random.normal(next(ks), (1, cout), jnp.float32)
        blk["ws1_g"] = (jax.random.normal(next(ks), (zdim, cout), jnp.float32)
                        * np.sqrt(2.0 / zdim)).astype(jnp.bfloat16)
        blk["ws1_b"] = (jax.random.normal(next(ks), (zdim, cout), jnp.float32)
                        * np.sqrt(2.0 / zdim)).astype(jnp.bfloat16)
        blk["bs1_g"] = jnp.ones((1, cout), jnp.float32)    # gamma bias init 1
        blk["bs1_b"] = jnp.zeros((1, cout), jnp.float32)
        blk["w2"] = (jax.random.normal(next(ks), (9, cout, cout), jnp.float32)
                     * np.sqrt(2.0 / (9 * cout))).astype(jnp.bfloat16)
        blk["b2"] = jnp.zeros((1, cout), jnp.float32)
        blk["nw2"] = 0.1 * jax.random.normal(next(ks), (1, cout), jnp.float32)
        blk["ws2_g"] = (jax.random.normal(next(ks), (zdim, cout), jnp.float32)
                        * np.sqrt(2.0 / zdim)).astype(jnp.bfloat16)
        blk["ws2_b"] = (jax.random.normal(next(ks), (zdim, cout), jnp.float32)
                        * np.sqrt(2.0 / zdim)).astype(jnp.bfloat16)
        blk["bs2_g"] = jnp.ones((1, cout), jnp.float32)
        blk["bs2_b"] = jnp.zeros((1, cout), jnp.float32)
        blocks.append(blk)
    p["blocks"] = blocks

    rgbs = []
    for i in range(max_step + 1):
        c = OUT_CH[i]
        w3 = jax.random.normal(next(ks), (c, 3), jnp.float32) * np.sqrt(2.0 / c)
        # Lane-dense 128-wide rgb weight slab (cols 3..127 are zero; wrapper slices [:3]).
        w = jnp.zeros((c, 128), jnp.float32).at[:, :3].set(w3).astype(jnp.bfloat16)
        rgbs.append({"w": w, "b": jnp.zeros((1, 128), jnp.float32)})
    p["to_rgb"] = rgbs
    return p


def generator_forward(params, z, noise_nchw, step=0, alpha=-1.0):
    """Single-style forward (list-of-one input), matching the PyTorch module."""
    # TODO(synk): multi-style mixing (random inject_index / mixing_range) and mean_style
    # blending are host-side control flow and are not implemented here.
    B, Z = z.shape
    style = run_mapping(z, params["map_w"], params["map_b"])
    style3 = style.reshape(B, 1, Z).astype(jnp.bfloat16)

    noise_flat = [n.reshape(n.shape[0], n.shape[2] * n.shape[3], 1).astype(jnp.float32)
                  for n in noise_nchw]

    out4 = None
    H = W = 4
    for i in range(step + 1):
        blk = params["blocks"][i]
        is_last = (i == step)
        blend = is_last and i > 0 and (0.0 <= alpha < 1.0)
        skip128 = None

        if i == 0:
            h_flat = run_initial_block(blk["const"], noise_flat[0], blk["nw1"], style3,
                                       blk["ws1_g"], blk["ws1_b"],
                                       blk["bs1_g"], blk["bs1_b"])
            H, W = 4, 4
        else:
            xw = upsample_w_and_pad(out4)
            H, W = 2 * H, 2 * W
            if blend:
                h_flat, skip128 = run_styled_conv_up(
                    xw, blk["w1"], blk["b1"], noise_flat[i], blk["nw1"], style3,
                    blk["ws1_g"], blk["ws1_b"], blk["bs1_g"], blk["bs1_b"],
                    wrgb_prev=params["to_rgb"][i - 1]["w"],
                    brgb_prev=params["to_rgb"][i - 1]["b"])
            else:
                h_flat = run_styled_conv_up(
                    xw, blk["w1"], blk["b1"], noise_flat[i], blk["nw1"], style3,
                    blk["ws1_g"], blk["ws1_b"], blk["bs1_g"], blk["bs1_b"])
        h4 = h_flat.reshape(B, H, W, -1)

        rgb128 = None
        if W % 8 == 0:
            xp = pad_hw(h4)
            if is_last:
                out_flat, rgb128 = run_styled_conv(
                    xp, blk["w2"], blk["b2"], noise_flat[i], blk["nw2"], style3,
                    blk["ws2_g"], blk["ws2_b"], blk["bs2_g"], blk["bs2_b"],
                    wrgb=params["to_rgb"][i]["w"], brgb=params["to_rgb"][i]["b"])
            else:
                out_flat = run_styled_conv(
                    xp, blk["w2"], blk["b2"], noise_flat[i], blk["nw2"], style3,
                    blk["ws2_g"], blk["ws2_b"], blk["bs2_g"], blk["bs2_b"])
        else:
            xc = im2col3x3(h4)
            w2c = blk["w2"].reshape(-1, blk["w2"].shape[2])
            if is_last:
                out_flat, rgb128 = run_styled_conv_im2col(
                    xc, w2c, blk["b2"], noise_flat[i], blk["nw2"], style3,
                    blk["ws2_g"], blk["ws2_b"], blk["bs2_g"], blk["bs2_b"],
                    wrgb=params["to_rgb"][i]["w"], brgb=params["to_rgb"][i]["b"])
            else:
                out_flat = run_styled_conv_im2col(
                    xc, w2c, blk["b2"], noise_flat[i], blk["nw2"], style3,
                    blk["ws2_g"], blk["ws2_b"], blk["bs2_g"], blk["bs2_b"])
        out4 = out_flat.reshape(B, H, W, -1)

        if is_last:
            rgb = rgb128[:, :, :3]
            if blend:
                skip = skip128[:, :, :3]
                rgb = (1.0 - alpha) * skip + alpha * rgb
            rgb = rgb.reshape(B, H, W, 3)
            return jnp.transpose(rgb, (0, 3, 1, 2))   # back to NCHW like PyTorch
    raise ValueError("invalid step")


if __name__ == "__main__":
    ZDIM = 512
    B = 2
    STEP = 1                        # output resolution 4 * 2**STEP = 8x8 (small demo)
    root = jax.random.PRNGKey(0)
    k_param, k_z, k_noise = jax.random.split(root, 3)

    params = init_generator_params(k_param, ZDIM, max_step=STEP)
    z = jax.random.normal(k_z, (B, ZDIM), jnp.float32)
    noise_keys = jax.random.split(k_noise, STEP + 1)
    noise = [jax.random.normal(noise_keys[i], (B, 1, 4 * 2 ** i, 4 * 2 ** i), jnp.float32)
             for i in range(STEP + 1)]

    out = generator_forward(params, z, noise, step=STEP, alpha=-1.0)
    out = jax.block_until_ready(out)
    assert out.shape == (B, 3, 4 * 2 ** STEP, 4 * 2 ** STEP), out.shape
    assert bool(jnp.all(jnp.isfinite(out)))
    print("KERNEL_OK")
</pallas_src>

<mosaic_0001>
module attributes {stable_mosaic.version = 11 : i64} {
  func.func @_mapping_kernel(%arg0: i32, %arg1: memref<2x512xf32, #tpu.memory_space<vmem>>, %arg2: memref<1x512x512xbf16, #tpu.memory_space<vmem>>, %arg3: memref<1x1x512xf32, #tpu.memory_space<vmem>>, %arg4: memref<2x512xf32, #tpu.memory_space<vmem>>, %arg5: memref<2x512xf32, #tpu.memory_space<vmem>>) attributes {dimension_semantics = [#tpu.dimension_semantics<arbitrary>], iteration_bounds = array<i64: 8>, scalar_prefetch = 0 : i64, scratch_operands = 1 : i64, tpu.core_type = #tpu.core_type<tc>, window_params = [{pipeline_mode = #tpu.pipeline_mode<synchronous>, transform_indices = @transform_0, window_bounds = array<i64: 2, 512>}, {transform_indices = @transform_1, window_bounds = array<i64: 1, 512, 512>}, {transform_indices = @transform_2, window_bounds = array<i64: 1, 1, 512>}, {pipeline_mode = #tpu.pipeline_mode<synchronous>, transform_indices = @transform_3, window_bounds = array<i64: 2, 512>}]} {
    %c0_i32 = arith.constant 0 : i32
    %0 = arith.cmpi eq, %arg0, %c0_i32 : i32
    %1 = arith.extui %0 : i1 to i32
    %c0_i32_0 = arith.constant 0 : i32
    %2 = arith.cmpi ne, %1, %c0_i32_0 : i32
    scf.if %2 {
      %c0_14 = arith.constant 0 : index
      %c0_15 = arith.constant 0 : index
      %19 = vector.load %arg1[%c0_14, %c0_15] : memref<2x512xf32, #tpu.memory_space<vmem>>, vector<2x512xf32>
      %20 = arith.mulf %19, %19 : vector<2x512xf32>
      %cst_16 = arith.constant dense<0.000000e+00> : vector<2xf32>
      %21 = vector.multi_reduction <add>, %20, %cst_16 [1] : vector<2x512xf32> to vector<2xf32>
      %22 = vector.shape_cast %21 : vector<2xf32> to vector<2x1xf32>
      %cst_17 = arith.constant 5.120000e+02 : f32
      %23 = vector.broadcast %cst_17 : f32 to vector<2x1xf32>
      %24 = arith.divf %22, %23 : vector<2x1xf32>
      %cst_18 = arith.constant 9.99999993E-9 : f32
      %25 = vector.broadcast %cst_18 : f32 to vector<2x1xf32>
      %26 = arith.addf %24, %25 : vector<2x1xf32>
      %27 = math.rsqrt %26 : vector<2x1xf32>
      %28 = vector.broadcast %27 : vector<2x1xf32> to vector<2x512xf32>
      %29 = arith.mulf %19, %28 : vector<2x512xf32>
      %c0_19 = arith.constant 0 : index
      %c0_20 = arith.constant 0 : index
      %30 = vector.load %arg5[%c0_19, %c0_20] : memref<2x512xf32, #tpu.memory_space<vmem>>, vector<2x512xf32>
      tpu.vector_store %arg5[%c0_19, %c0_20], %29 {strides = array<i32>} : memref<2x512xf32, #tpu.memory_space<vmem>>, vector<2x512xf32>,
    } else {
    }
    %c0 = arith.constant 0 : index
    %c0_1 = arith.constant 0 : index
    %3 = vector.load %arg5[%c0, %c0_1] : memref<2x512xf32, #tpu.memory_space<vmem>>, vector<2x512xf32>
    %4 = arith.truncf %3 : vector<2x512xf32> to vector<2x512xbf16>
    %c0_2 = arith.constant 0 : index
    %c0_3 = arith.constant 0 : index
    %c0_4 = arith.constant 0 : index
    %5 = vector.load %arg2[%c0_2, %c0_3, %c0_4] : memref<1x512x512xbf16, #tpu.memory_space<vmem>>, vector<1x512x512xbf16>
    %6 = vector.shape_cast %5 : vector<1x512x512xbf16> to vector<512x512xbf16>
    %cst = arith.constant dense<0.000000e+00> : vector<2x512xf32>
    %7 = tpu.matmul %4, %6, %cst {dimension_numbers = #tpu.dot_dimension_numbers<[1], [0], [0], [1], [0, 0, 1, 1], [], []>} : vector<2x512xbf16>, vector<512x512xbf16>, vector<2x512xf32> -> vector<2x512xf32>
    %c0_5 = arith.constant 0 : index
    %c0_6 = arith.constant 0 : index
    %c0_7 = arith.constant 0 : index
    %8 = vector.load %arg3[%c0_5, %c0_6, %c0_7] : memref<1x1x512xf32, #tpu.memory_space<vmem>>, vector<1x1x512xf32>
    %9 = vector.shape_cast %8 : vector<1x1x512xf32> to vector<1x512xf32>
    %10 = vector.broadcast %9 : vector<1x512xf32> to vector<2x512xf32>
    %11 = arith.addf %7, %10 : vector<2x512xf32>
    %cst_8 = arith.constant 0.000000e+00 : f32
    %12 = vector.broadcast %cst_8 : f32 to vector<2x512xf32>
    %13 = arith.cmpf oge, %11, %12 : vector<2x512xf32>
    %cst_9 = arith.constant 2.000000e-01 : f32
    %14 = vector.broadcast %cst_9 : f32 to vector<2x512xf32>
    %15 = arith.mulf %14, %11 : vector<2x512xf32>
    %16 = arith.select %13, %11, %15 : vector<2x512xi1>, vector<2x512xf32>
    %c0_10 = arith.constant 0 : index
    %c0_11 = arith.constant 0 : index
    %17 = vector.load %arg5[%c0_10, %c0_11] : memref<2x512xf32, #tpu.memory_space<vmem>>, vector<2x512xf32>
    tpu.vector_store %arg5[%c0_10, %c0_11], %16 {strides = array<i32>} : memref<2x512xf32, #tpu.memory_space<vmem>>, vector<2x512xf32>,
    %c0_12 = arith.constant 0 : index
    %c0_13 = arith.constant 0 : index
    %18 = vector.load %arg4[%c0_12, %c0_13] : memref<2x512xf32, #tpu.memory_space<vmem>>, vector<2x512xf32>
    tpu.vector_store %arg4[%c0_12, %c0_13], %16 {strides = array<i32>} : memref<2x512xf32, #tpu.memory_space<vmem>>, vector<2x512xf32>,
    return
  }
  func.func @transform_0(%arg0: i32) -> (i32, i32) {
    %c0_i32 = arith.constant 0 : i32
    %c0_i32_0 = arith.constant 0 : i32
    %c0_i32_1 = arith.constant 0 : i32
    return %c0_i32, %c0_i32_0 : i32, i32
  }
  func.func @transform_1(%arg0: i32) -> (i32, i32, i32) {
    %c0_i32 = arith.constant 0 : i32
    %c0_i32_0 = arith.constant 0 : i32
    %c0_i32_1 = arith.constant 0 : i32
    return %arg0, %c0_i32, %c0_i32_0 : i32, i32, i32
  }
  func.func @transform_2(%arg0: i32) -> (i32, i32, i32) {
    %c0_i32 = arith.constant 0 : i32
    %c0_i32_0 = arith.constant 0 : i32
    %c0_i32_1 = arith.constant 0 : i32
    return %arg0, %c0_i32, %c0_i32_0 : i32, i32, i32
  }
  func.func @transform_3(%arg0: i32) -> (i32, i32) {
    %c0_i32 = arith.constant 0 : i32
    %c0_i32_0 = arith.constant 0 : i32
    %c0_i32_1 = arith.constant 0 : i32
    return %c0_i32, %c0_i32_0 : i32, i32
  }
}

</mosaic_0001>

<bundles_post_ra>
// kernel: tpu_custom_call.1
= control target key start
LH: loop header
LB: loop body
LE: loop exit
PB: predicated region body
PF: predicated region fallthrough
CT: control target
= control target key end

     0   :  { %8 = vsyncpa [#allocation4], 0  ;;  %s2304_s0 = inlined_call_operand.hbm [shape: f32[2,512], index: 0, kind: input, shape index: {}]   ;;  %s2305_s1 = inlined_call_operand.hbm [shape: bf16[8,512,512], index: 1, kind: input, shape index: {}]   ;;  %s2306_s2 = inlined_call_operand.hbm [shape: f32[8,1,512], index: 2, kind: input, shape index: {}]   ;;  %s2307_s3 = inlined_call_operand.hbm [shape: f32[2,512], index: 3, kind: output, shape index: {}]  }
   0x1   :  { %9 = vsyncpa [#allocation7], 0 }
   0x2   :  { %11 = vsyncpa [#allocation7 + $0x1], 0 }
   0x3   :  { %12 = vsyncpa [#allocation5], 0  ;;  %s1974_s12 = smov 0   ;;  %s1976_s13 = smov 0  }
   0x4   :  { %s1978_s14 = smov 0   ;;  %s1980_s15 = smov 0  }
   0x5 LB: > { %s1995_s16 = sadd.s32 1, %s1943_s15   ;;  %s46_s17 = sadd.s32 1, %s1939_s14  ;;  %s1943_s15 = sphi %s1980_s15, %s2322_s15   ;;  %s1939_s14 = sphi %s1978_s14, %s2321_s14   ;;  %s1935_s13 = sphi %s1976_s13, %s2320_s13   ;;  %s1931_s12 = sphi %s1974_s12, %s2319_s12  }
   0x6   : > { %s43_s18 = ssub.s32 %s1943_s15, %s1995_s16  ;;  %p53_p0 = scmp.ne.s32.totalorder %s1939_s14, %s1935_s13 }
   0x7   : > { %p44_p1 = scmp.eq.s32.totalorder %s43_s18, 0  ;;  %p54_p2 = scmp.eq.s32.totalorder %s1943_s15, 0 }
   0x8   : > { %p1557_p3 = scmp.lt.s32.totalorder %s1943_s15, 8  ;;  %s141_s20 = sand.u32 1, %s1943_s15  }
   0x9   : > { %s2005_s19 = scalar_select %p44_p1, %s1939_s14, %s46_s17  }
   0xa   : > { %p55_p4 = por %p54_p2, %p53_p0  ;;  %s143_s21 = sand.u32 1, %s1939_s14  }
   0xb   : > { %s1388_s22 = sshll.u32 %s143_s21, 10  ;;  %s1531_s23 = sshll.u32 %s1943_s15, 14 }
   0xc   : > { %s2015_s26 = scalar_lea.hbm %s2305_s1, %s1531_s23  ;;  %s145_s27 = scalar_lea.vmem [#allocation6], %s1388_s22 }
   0xd   : > { %s152_s28 = sshll.u32 %s145_s27, 4  ;;  %p2017_p5 = pnand %p1557_p3, %p55_p4  ;;  %s2021_s28 = int_to_ptr.vmem [resolvable:$true] %s152_s28 }
   0xe   : > { %s2023_s30 = scalar_lea.sflag [#allocation7], %s141_s20  ;;  %s1795_s4 = scalar_lea.hbm %s2015_s26, 16384 }
   0xf   : > { %p1796_p6 = scmp.ne.s32.totalorder %s2015_s26, %s1795_s4  ;;  %p2308_p7 = pneg %p2017_p5 }
  0x10   : > { %s1800_s7 = scalar_lea.hbm %s2305_s1, 131072  ;;  %p1801_p10 = scmp.lt.s32.totalorder %s2015_s26, %s2305_s1 }
  0x11   : > { %p1798_p8 = pnand %p2308_p7, %p1796_p6  ;;  %p1802_p11 = scmp.lt.s32.totalorder %s1800_s7, %s1795_s4 }
  0x13   : > { %p1799_p9 = pneg %p1798_p8  ;;  %p1803_p12 = por %p1802_p11, %p1801_p10 }
  0x15   : > { %p1804_p13 = pnand %p1803_p12, %p1799_p9 }
  0x17   : > { %1807 = shalt.err (!%p1804_p13)
}
  0x18   : > { %s1808_s10 = scalar_lea.vmem %s2021_s28, 16384  ;;  %s1945_s11 = smov [#allocation6]  }
  0x19   : > { %p1809_p0 = scmp.ne.s32.totalorder %s2021_s28, %s1808_s10  ;;  %s1813_s17 = sshll.u32 %s1945_s11, 4  ;;  %s1814_s17 = int_to_ptr.vmem [resolvable:$false] %s1813_s17 }
  0x1a   : > { %s1815_s18 = scalar_lea.vmem %s1814_s17, 32768  ;;  %p1816_p3 = scmp.lt.s32.totalorder %s2021_s28, %s1814_s17 }
  0x1b   : > { %p1811_p1 = pnand %p1809_p0, %p2308_p7  ;;  %p1817_p4 = scmp.lt.s32.totalorder %s1815_s18, %s1808_s10 }
  0x1d   : > { %p1812_p2 = pneg %p1811_p1  ;;  %p1818_p6 = por %p1817_p4, %p1816_p3 }
  0x1f   : > { %p1819_p8 = pnand %p1818_p6, %p1812_p2 }
  0x21   : > { %1822 = shalt.err (!%p1819_p8)
}
  0x22   : > { %s1946_s20 = smov 256   ;;  %s1947_s22 = smov 16  }
  0x23   : > { %1552 = dma.hbm_to_vmem [thread:$0]  (!%p2017_p5), %s2015_s26, 16384, %s2021_s28, %s2023_s30, %s1946_s20, %s1946_s20, %s1947_s22  }
  0x24   : > { %s2051_s23 = sadd.s32 4294967295, %s1943_s15   ;;  %p59_p10 = scmp.ne.s32.totalorder %s1935_s13, %s1931_s12 }
  0x25   : > { %p2309_p9 = scmp.eq.s32.totalorder %s2051_s23, 0  ;;  %p1385_p11 = scmp.ge.s32.totalorder %s1943_s15, 1 }
  0x26   : > { %p117_p12 = scmp.lt.s32.totalorder %s1943_s15, 9  ;;  %s1948_s26 = smov [#allocation3]  }
  0x27   : > { %p2061_p0 = por %p2309_p9, %p59_p10  ;;  %s130_s27 = sshll.u32 %s1948_s26, 4  ;;  %s131_s27 = int_to_ptr.vmem [resolvable:$true] %s130_s27 }
  0x28   : > { %p2065_p1 = pnand %p1385_p11, %p117_p12  ;;  %s1391_s28 = sshll.u32 %s143_s21, 2 }
  0x29   : > { %s2312_s24 = scalar_select %p2061_p0, 1, 0 }
  0x2a   : > { %p1545_p2 = pneg %p2065_p1  ;;  %s1532_s12 = sshll.u32 %s1943_s15, 6 }
  0x2b   : > { %s166_s4 = scalar_lea.vmem [#allocation8], %s1391_s28  ;;  %s2079_s8 = scalar_lea.hbm %s2306_s2, %s1532_s12 }
  0x2c   : > { %s174_s5 = sshll.u32 %s166_s4, 4  ;;  %p1546_p3 = pnand %p1545_p2, %p2309_p9  ;;  %s2081_s5 = int_to_ptr.vmem [resolvable:$true] %s174_s5 }
  0x2d   : > { %s1834_s9 = scalar_lea.vmem %s131_s27, 128  ;;  %p1842_p11 = scmp.lt.s32.totalorder %s131_s27, %s131_s27 }
  0x2e   : > { %p1825_p4 = pneg %p1546_p3  ;;  %p1835_p6 = scmp.ne.s32.totalorder %s131_s27, %s1834_s9 }
  0x2f   : > { %p1843_p12 = scmp.lt.s32.totalorder %s1834_s9, %s1834_s9 }
  0x30   : > { %p1837_p8 = pnand %p1835_p6, %p1825_p4 }
  0x31   : > { %p1844_p13 = por %p1843_p12, %p1842_p11 }
  0x32   : > { %p1838_p10 = pneg %p1837_p8 }
  0x34   : > { %p1845_p7 = pnand %p1844_p13, %p1838_p10 }
  0x36   : > { %1848 = shalt.err (!%p1845_p7)
}
  0x37   : > { %1548 = dma.hbm_to_vmem [thread:$0]  (!%p1546_p3), %s2304_s0, 128, %s131_s27, [#allocation4]  }
  0x38   : > { %s1849_s10 = scalar_lea.hbm %s2079_s8, 64  ;;  %p2314_p9 = pneg %p2017_p5 }
  0x39   : > { %p1850_p2 = scmp.ne.s32.totalorder %s2079_s8, %s1849_s10  ;;  %s1854_s18 = scalar_lea.hbm %s2306_s2, 512 }
  0x3a   : > { %p1855_p7 = scmp.lt.s32.totalorder %s2079_s8, %s2306_s2  ;;  %p1856_p13 = scmp.lt.s32.totalorder %s1854_s18, %s1849_s10 }
  0x3b   : > { %p1852_p0 = pnand %p1850_p2, %p2314_p9 }
  0x3c   : > { %p1857_p6 = por %p1856_p13, %p1855_p7 }
  0x3d   : > { %p1853_p4 = pneg %p1852_p0 }
  0x3f   : > { %p1858_p8 = pnand %p1857_p6, %p1853_p4 }
  0x41   : > { %1861 = shalt.err (!%p1858_p8)
}
  0x42   : > { %s1862_s26 = scalar_lea.vmem %s2081_s5, 64  ;;  %s1949_s27 = smov [#allocation8]  }
  0x43   : > { %p1863_p3 = scmp.ne.s32.totalorder %s2081_s5, %s1862_s26  ;;  %s1867_s28 = sshll.u32 %s1949_s27, 4  ;;  %s1868_s28 = int_to_ptr.vmem [resolvable:$false] %s1867_s28 }
  0x44   : > { %s1869_s12 = scalar_lea.vmem %s1868_s28, 128  ;;  %p1870_p11 = scmp.lt.s32.totalorder %s2081_s5, %s1868_s28 }
  0x45   : > { %p1865_p0 = pnand %p1863_p3, %p2314_p9  ;;  %p1871_p12 = scmp.lt.s32.totalorder %s1869_s12, %s1862_s26 }
  0x47   : > { %p1866_p10 = pneg %p1865_p0  ;;  %p1872_p2 = por %p1871_p12, %p1870_p11 }
  0x49   : > { %p1873_p7 = pnand %p1872_p2, %p1866_p10 }
  0x4b   : > { %1876 = shalt.err (!%p1873_p7)
}
  0x4c   : > { %1555 = dma.hbm_to_vmem [thread:$0]  (!%p2017_p5), %s2079_s8, 64, %s2081_s5, %s2023_s30  }
  0x4d   : > { %183 = sbr.rel (%p2065_p1) target bundleno = 616 (0x268), region = 32  ;;  %p2315_p4 = scmp.eq.s32.totalorder (!%p2065_p1), %s2051_s23, 0 }
  0x52   : > { %1918 = dma.done.wait (%p2315_p4), [#allocation4], 128   ;;  %p2316_p13 = pmov %p2315_p4 }
  0x53   : > { %s189_s4 = sand.u32 1, %s2051_s23   ;;  %s191_s6 = sand.u32 1, %s1935_s13  }
  0x54   : > { %1920 = vsyncadd (%p2316_p13), [#allocation4], 4294967168  ;;  %s1396_s7 = sshll.u32 %s191_s6, 10  ;;  %s190_s29 = scalar_lea.sflag [#allocation7], %s189_s4 }
  0x55   : > { %s2117_s9 = scalar_lea.vmem [#allocation6], %s1396_s7  ;;  %p2317_p6 = scmp.ne.s32.totalorder %s2312_s24, 0 }
  0x57   : > { %1922 = dma.done.wait (%p2317_p6), %s190_s29, 16448  }
  0x58   : > { %1924 = vsyncadd (%p2317_p6), %s190_s29, 4294950848  ;;  %s2123_s30 = sshll.u32 %s191_s6, 2  ;;  %p2318_p5 = scmp.ne.s32.totalorder %s2051_s23, 0 }
  0x59   : > { %s202_s25 = scalar_lea.vmem [#allocation8], %s2123_s30 }
  0x5a   : > { %228 = sbr.rel (%p2318_p5) target bundleno = 274 (0x112), region = 48 }
  0x5f   : > { %v229_v0 = vld [vmem:[#allocation3] sm:$0xff]  ;;  %v236_v1 = vlaneseq  ;;  %v1950_v3 = vmov 1983009808   ;;  %vm253_vm0 = vcmask 1041408   ;;  %v1951_v23 = vmov 269488144  }
  0x60   : > { %v230_v2 = vmul.f32 %v229_v0, %v229_v0  ;;  %v234_v4 = vunpack.c.l.s4 %v1950_v3  ;;  %v269_v24 = vunpack.c.l.s4 %v1951_v23 }
  0x61   : > { %v237_v5 = vshrl.u32 %v236_v1, 7 }
  0x62   : > { %v232_v6 = vcombine.high %v230_v2, %v230_v2  ;;  %v235_v7 = vunpack.c.0.s8 %v234_v4  ;;  %v270_v25 = vunpack.c.0.s8 %v269_v24 }
  0x64   : > { %v238_v8 = vsub.s32 %v235_v7, %v237_v5  ;;  %v273_v26 = vsub.s32 %v270_v25, %v237_v5 }
  0x66   : > { %v239_v9 = vrot.slane %v230_v2, %v238_v8  ;;  %v246_v10 = vrot.slane %v232_v6, %v238_v8 }
  0x68   : > { %v247_v11 = vcombine.high %v239_v9, %v239_v9  ;;  %v248_v12 = vcombine.high %v246_v10, %v246_v10  ;;  %v254_v13 = vsel %vm253_vm0, %v239_v9, 0.0  ;;  %v257_v15 = vsel %vm253_vm0, %v246_v10, 0.0 }
  0x6a   : > { %v255_v14 = vsel %vm253_vm0, %v247_v11, 0.0  ;;  %v259_v17 = vsel %vm253_vm0, %v248_v12, 0.0 }
  0x6b   : > { %v256_v16 = vadd.f32 %v255_v14, %v254_v13 }
  0x6d   : > { %v258_v18 = vadd.f32 %v257_v15, %v256_v16 }
  0x6f   : > { %v260_v19 = vadd.f32 %v259_v17, %v258_v18 }
  0x71   : > { %261 = vadd.xlane.f32.xlu0 %v260_v19 }
  0xfa   : > { %v262_v20 = vpop.xlane.xlu0 %261 }
  0xfb   : > { %v264_v21 = vmul.f32 0.001953125, %v262_v20 }
  0xfd   : > { %v265_v22 = vadd.f32 1e-08, %v264_v21 }
  0xff   : > { %1600 = vrsqrt.f32 %v265_v22 }
 0x10c   : > { %v1601_v27 = vpop.eup %1600 }
 0x10d   : > { %v274_v28 = vrot.slane %v1601_v27, %v273_v26 }
 0x10f   : > { %v276_v29 = vmul.f32 %v274_v28, %v229_v0 }
 0x111   : > { %277 = vst [vmem:[#allocation2] sm:$0xff] %v276_v29 }
 0x112 PF: > { %v1602_v30 = vld [vmem:[%s2117_s9 + $0xe4] ss:$16 sps:$4 sm:$0xff]   ;;  %v1606_v32 = vld [vmem:[%s2117_s9 + $0xe0] ss:$16 sps:$4 sm:$0xff]   ;;  %v1952_v2 = vmov 1983009808   ;;  %v284_v4 = vlaneseq }
 0x113   : > { %v1604_v31 = vld [vmem:[%s2117_s9 + $0x2e4] ss:$16 sps:$4 sm:$0xff]   ;;  %1095 = vmatprep.subr.bf16.mxu0 %v1602_v30  ;;  %v1607_v33 = vld [vmem:[%s2117_s9 + $0x2e0] ss:$16 sps:$4 sm:$0xff]   ;;  %v282_v3 = vunpack.c.l.s4 %v1952_v2  ;;  %v1731_v2 = vld [vmem:[%s2117_s9 + $0x4c] ss:$16 sps:$4 sm:$0xff]  }
 0x114   : > { %1136 = vmatprep.subr.bf16.mxu1 %v1604_v31  ;;  %v1608_v34 = vld [vmem:[%s2117_s9 + $0xc4] ss:$16 sps:$4 sm:$0xff]   ;;  %1096 = vmatpush1.bf16.msra.mxu0 %v1606_v32  ;;  %v1612_v36 = vld [vmem:[%s2117_s9 + $0xc0] ss:$16 sps:$4 sm:$0xff]   ;;  %v2167_v9 = vshrl.u32 %v284_v4, 7  ;;  %s1953_s24 = smov [#allocation9]  }
 0x115   : > { %1137 = vmatpush1.bf16.msra.mxu1 %v1607_v33  ;;  %v1610_v35 = vld [vmem:[%s2117_s9 + $0x2c4] ss:$16 sps:$4 sm:$0xff]   ;;  %1097 = vmatprep.subr.bf16.mxu0 %v1608_v34  ;;  %v1613_v37 = vld [vmem:[%s2117_s9 + $0x2c0] ss:$16 sps:$4 sm:$0xff]   ;;  %v283_v8 = vunpack.c.0.s8 %v282_v3  ;;  %v1734_v3 = vld [vmem:[%s2117_s9 + $0x24c] ss:$16 sps:$4 sm:$0xff]  }
 0x116   : > { %1138 = vmatprep.subr.bf16.mxu1 %v1610_v35  ;;  %v1614_v38 = vld [vmem:[%s2117_s9 + $0xa4] ss:$16 sps:$4 sm:$0xff]   ;;  %v1618_v40 = vld [vmem:[%s2117_s9 + $0xa0] ss:$16 sps:$4 sm:$0xff]   ;;  %v1729_v4 = vld [vmem:[%s2117_s9 + $0x48] ss:$16 sps:$4 sm:$0xff]  }
 0x117   : > { %v1616_v39 = vld [vmem:[%s2117_s9 + $0x2a4] ss:$16 sps:$4 sm:$0xff]   ;;  %v1619_v41 = vld [vmem:[%s2117_s9 + $0x2a0] ss:$16 sps:$4 sm:$0xff]   ;;  %v2175_v15 = vsub.s32 %v283_v8, %v2167_v9  ;;  %v1735_v8 = vld [vmem:[%s2117_s9 + $0x28] ss:$16 sps:$4 sm:$0xff]  }
 0x118   : > { %1098 = vmatpush1.bf16.msra.mxu0 %v1612_v36  ;;  %v1620_v42 = vld [vmem:[%s2117_s9 + $0x84] ss:$16 sps:$4 sm:$0xff]   ;;  %v1624_v44 = vld [vmem:[%s2117_s9 + $0x80] ss:$16 sps:$4 sm:$0xff]   ;;  %s1302_s5 = sshll.u32 %s1953_s24, 4  ;;  %p1559_p1 = scmp.eq.s32.totalorder %s2051_s23, 7  ;;  %s1303_s5 = int_to_ptr.vmem [resolvable:$true] %s1302_s5 }
 0x119   : > { %1139 = vmatpush1.bf16.msra.mxu1 %v1613_v37  ;;  %1099 = vmatprep.subr.bf16.mxu0 %v1614_v38  ;;  %v1622_v43 = vld [vmem:[%s2117_s9 + $0x284] ss:$16 sps:$4 sm:$0xff]   ;;  %v1625_v45 = vld [vmem:[%s2117_s9 + $0x280] ss:$16 sps:$4 sm:$0xff]   ;;  %s1877_s8 = scalar_lea.vmem %s1303_s5, 128  ;;  %p1884_p0 = scmp.lt.s32.totalorder %s1303_s5, %s1303_s5 }
 0x11a   : > { %1140 = vmatprep.subr.bf16.mxu1 %v1616_v39  ;;  %v1626_v46 = vld [vmem:[%s2117_s9 + $0x64] ss:$16 sps:$4 sm:$0xff]   ;;  %v1630_v48 = vld [vmem:[%s2117_s9 + $0x60] ss:$16 sps:$4 sm:$0xff]   ;;  %p1878_p8 = scmp.ne.s32.totalorder %s1303_s5, %s1877_s8  ;;  %p1885_p10 = scmp.lt.s32.totalorder %s1877_s8, %s1877_s8 }
 0x11b   : > { %v1628_v47 = vld [vmem:[%s2117_s9 + $0x264] ss:$16 sps:$4 sm:$0xff]   ;;  %v1631_v49 = vld [vmem:[%s2117_s9 + $0x260] ss:$16 sps:$4 sm:$0xff]  }
 0x11c   : > { %1100 = vmatpush1.bf16.msra.mxu0 %v1618_v40  ;;  %v1632_v50 = vld [vmem:[%s2117_s9 + $0x44] ss:$16 sps:$4 sm:$0xff]   ;;  %v1636_v52 = vld [vmem:[%s2117_s9 + $0x40] ss:$16 sps:$4 sm:$0xff]   ;;  %p1879_p3 = pnand %p1878_p8, %p1559_p1  ;;  %p1886_p11 = por %p1885_p10, %p1884_p0 }
 0x11d   : > { %1141 = vmatpush1.bf16.msra.mxu1 %v1619_v41  ;;  %1101 = vmatprep.subr.bf16.mxu0 %v1620_v42  ;;  %v1634_v51 = vld [vmem:[%s2117_s9 + $0x244] ss:$16 sps:$4 sm:$0xff]   ;;  %v1637_v53 = vld [vmem:[%s2117_s9 + $0x240] ss:$16 sps:$4 sm:$0xff]  }
 0x11e   : > { %1142 = vmatprep.subr.bf16.mxu1 %v1622_v43  ;;  %v1638_v54 = vld [vmem:[%s2117_s9 + $0x24] ss:$16 sps:$4 sm:$0xff]   ;;  %v1642_v56 = vld [vmem:[%s2117_s9 + $0x20] ss:$16 sps:$4 sm:$0xff]   ;;  %p1880_p9 = pneg %p1879_p3 }
 0x11f   : > { %v1640_v55 = vld [vmem:[%s2117_s9 + $0x224] ss:$16 sps:$4 sm:$0xff]   ;;  %v1643_v57 = vld [vmem:[%s2117_s9 + $0x220] ss:$16 sps:$4 sm:$0xff]  }
 0x120   : > { %1102 = vmatpush1.bf16.msra.mxu0 %v1624_v44  ;;  %v1644_v58 = vld [vmem:[%s2117_s9 + $0x4] ss:$16 sps:$4 sm:$0xff]   ;;  %v1648_v60 = vld [vmem:[%s2117_s9] ss:$16 sps:$4 sm:$0xff]   ;;  %v1701_v44 = vld [vmem:[%s2117_s9 + $0xec] ss:$16 sps:$4 sm:$0xff]   ;;  %p1887_p12 = pnand %p1886_p11, %p1880_p9 }
 0x121   : > { %1143 = vmatpush1.bf16.msra.mxu1 %v1625_v45  ;;  %1103 = vmatprep.subr.bf16.mxu0 %v1626_v46  ;;  %v1646_v59 = vld [vmem:[%s2117_s9 + $0x204] ss:$16 sps:$4 sm:$0xff]   ;;  %v1649_v61 = vld [vmem:[%s2117_s9 + $0x200] ss:$16 sps:$4 sm:$0xff]   ;;  %v1704_v45 = vld [vmem:[%s2117_s9 + $0x2ec] ss:$16 sps:$4 sm:$0xff]  }
 0x122   : > { %1144 = vmatprep.subr.bf16.mxu1 %v1628_v47  ;;  %v1650_v62 = vld [vmem:[%s2117_s9 + $0x1e4] ss:$16 sps:$4 sm:$0xff]   ;;  %v1654_v0 = vld [vmem:[%s2117_s9 + $0x1e0] ss:$16 sps:$4 sm:$0xff]  }
 0x123   : > { %v1652_v63 = vld [vmem:[%s2117_s9 + $0x3e4] ss:$16 sps:$4 sm:$0xff]   ;;  %v1655_v1 = vld [vmem:[%s2117_s9 + $0x3e0] ss:$16 sps:$4 sm:$0xff]  }
 0x124   : > { %1104 = vmatpush1.bf16.msra.mxu0 %v1630_v48  ;;  %v1656_v5 = vld [vmem:[%s2117_s9 + $0x1c4] ss:$16 sps:$4 sm:$0xff]   ;;  %v1660_v7 = vld [vmem:[%s2117_s9 + $0x1c0] ss:$16 sps:$4 sm:$0xff]   ;;  %v1699_v48 = vld [vmem:[%s2117_s9 + $0xe8] ss:$16 sps:$4 sm:$0xff]  }
 0x125   : > { %1145 = vmatpush1.bf16.msra.mxu1 %v1631_v49  ;;  %1105 = vmatprep.subr.bf16.mxu0 %v1632_v50  ;;  %v1658_v6 = vld [vmem:[%s2117_s9 + $0x3c4] ss:$16 sps:$4 sm:$0xff]   ;;  %v1661_v10 = vld [vmem:[%s2117_s9 + $0x3c0] ss:$16 sps:$4 sm:$0xff]   ;;  %v1702_v49 = vld [vmem:[%s2117_s9 + $0x2e8] ss:$16 sps:$4 sm:$0xff]  }
 0x126   : > { %1146 = vmatprep.subr.bf16.mxu1 %v1634_v51  ;;  %v1662_v11 = vld [vmem:[%s2117_s9 + $0x1a4] ss:$16 sps:$4 sm:$0xff]   ;;  %v1666_v13 = vld [vmem:[%s2117_s9 + $0x1a0] ss:$16 sps:$4 sm:$0xff]   ;;  %v1707_v50 = vld [vmem:[%s2117_s9 + $0xcc] ss:$16 sps:$4 sm:$0xff]  }
 0x127   : > { %v1664_v12 = vld [vmem:[%s2117_s9 + $0x3a4] ss:$16 sps:$4 sm:$0xff]   ;;  %v1667_v14 = vld [vmem:[%s2117_s9 + $0x3a0] ss:$16 sps:$4 sm:$0xff]   ;;  %v1710_v51 = vld [vmem:[%s2117_s9 + $0x2cc] ss:$16 sps:$4 sm:$0xff]  }
 0x128   : > { %1106 = vmatpush1.bf16.msra.mxu0 %v1636_v52  ;;  %v1668_v16 = vld [vmem:[%s2117_s9 + $0x184] ss:$16 sps:$4 sm:$0xff]   ;;  %v1672_v19 = vld [vmem:[%s2117_s9 + $0x180] ss:$16 sps:$4 sm:$0xff]   ;;  %v1705_v52 = vld [vmem:[%s2117_s9 + $0xc8] ss:$16 sps:$4 sm:$0xff]  }
 0x129   : > { %1147 = vmatpush1.bf16.msra.mxu1 %v1637_v53  ;;  %1107 = vmatprep.subr.bf16.mxu0 %v1638_v54  ;;  %v1670_v17 = vld [vmem:[%s2117_s9 + $0x384] ss:$16 sps:$4 sm:$0xff]   ;;  %v1673_v22 = vld [vmem:[%s2117_s9 + $0x380] ss:$16 sps:$4 sm:$0xff]   ;;  %v1708_v53 = vld [vmem:[%s2117_s9 + $0x2c8] ss:$16 sps:$4 sm:$0xff]  }
 0x12a   : > { %1148 = vmatprep.subr.bf16.mxu1 %v1640_v55  ;;  %v278_v18 = vld [vmem:[#allocation2] sm:$0xff]  ;;  %v1713_v54 = vld [vmem:[%s2117_s9 + $0xac] ss:$16 sps:$4 sm:$0xff]  }
 0x12b   : > { %v287_v20 = vrot.slane %v278_v18, %v2175_v15  ;;  %v280_v21 = vcombine.high %v278_v18, %v278_v18  ;;  %v1674_v23 = vld [vmem:[%s2117_s9 + $0x164] ss:$16 sps:$4 sm:$0xff]   ;;  %v1678_v27 = vld [vmem:[%s2117_s9 + $0x160] ss:$16 sps:$4 sm:$0xff]   ;;  %v1716_v55 = vld [vmem:[%s2117_s9 + $0x2ac] ss:$16 sps:$4 sm:$0xff]  }
 0x12c   : > { %1108 = vmatpush1.bf16.msra.mxu0 %v1642_v56  ;;  %v1676_v24 = vld [vmem:[%s2117_s9 + $0x364] ss:$16 sps:$4 sm:$0xff]   ;;  %v1679_v30 = vld [vmem:[%s2117_s9 + $0x360] ss:$16 sps:$4 sm:$0xff]   ;;  %v1711_v56 = vld [vmem:[%s2117_s9 + $0xa8] ss:$16 sps:$4 sm:$0xff]  }
 0x12d   : > { %1149 = vmatpush1.bf16.msra.mxu1 %v1643_v57  ;;  %1109 = vmatprep.subr.bf16.mxu0 %v1644_v58  ;;  %v295_v25 = vcombine.high %v287_v20, %v287_v20  ;;  %v294_v26 = vrot.slane %v280_v21, %v2175_v15  ;;  %v1680_v31 = vld [vmem:[%s2117_s9 + $0x144] ss:$16 sps:$4 sm:$0xff]   ;;  %v1684_v34 = vld [vmem:[%s2117_s9 + $0x140] ss:$16 sps:$4 sm:$0xff]   ;;  %v2201_v46 = vpack.c.bf16 %v287_v20, %v287_v20  ;;  %v1714_v57 = vld [vmem:[%s2117_s9 + $0x2a8] ss:$16 sps:$4 sm:$0xff]  }
 0x12e   : > { %1150 = vmatprep.subr.bf16.mxu1 %v1646_v59  ;;  %v1682_v32 = vld [vmem:[%s2117_s9 + $0x344] ss:$16 sps:$4 sm:$0xff]   ;;  %v1685_v35 = vld [vmem:[%s2117_s9 + $0x340] ss:$16 sps:$4 sm:$0xff]   ;;  %v1719_v58 = vld [vmem:[%s2117_s9 + $0x8c] ss:$16 sps:$4 sm:$0xff]  }
 0x12f   : > { %v302_v28 = vpack.c.bf16 %v295_v25, %v295_v25  ;;  %v296_v29 = vcombine.high %v294_v26, %v294_v26  ;;  %v1686_v36 = vld [vmem:[%s2117_s9 + $0x124] ss:$16 sps:$4 sm:$0xff]   ;;  %v1690_v38 = vld [vmem:[%s2117_s9 + $0x120] ss:$16 sps:$4 sm:$0xff]   ;;  %v2203_v47 = vpack.c.bf16 %v294_v26, %v294_v26  ;;  %v1722_v59 = vld [vmem:[%s2117_s9 + $0x28c] ss:$16 sps:$4 sm:$0xff]  }
 0x130   : > { %1110 = vmatpush1.bf16.msra.mxu0 %v1648_v60  ;;  %v1688_v37 = vld [vmem:[%s2117_s9 + $0x324] ss:$16 sps:$4 sm:$0xff]   ;;  %v1691_v39 = vld [vmem:[%s2117_s9 + $0x320] ss:$16 sps:$4 sm:$0xff]   ;;  %v1717_v60 = vld [vmem:[%s2117_s9 + $0x88] ss:$16 sps:$4 sm:$0xff]  }
 0x131   : > { %1151 = vmatpush1.bf16.msra.mxu1 %v1649_v61  ;;  %1111 = vmatprep.subr.bf16.mxu0 %v1650_v62  ;;  %v304_v33 = vpack.c.bf16 %v296_v29, %v296_v29  ;;  %v1692_v40 = vld [vmem:[%s2117_s9 + $0x104] ss:$16 sps:$4 sm:$0xff]   ;;  %v1696_v42 = vld [vmem:[%s2117_s9 + $0x100] ss:$16 sps:$4 sm:$0xff]   ;;  %v1720_v61 = vld [vmem:[%s2117_s9 + $0x288] ss:$16 sps:$4 sm:$0xff]  }
 0x132   : > { %1152 = vmatprep.subr.bf16.mxu1 %v1652_v63  ;;  %1127 = vmatprep.mubr.bf16.mxu0 %v302_v28  ;;  %v1694_v41 = vld [vmem:[%s2117_s9 + $0x304] ss:$16 sps:$4 sm:$0xff]   ;;  %v1697_v43 = vld [vmem:[%s2117_s9 + $0x300] ss:$16 sps:$4 sm:$0xff]   ;;  %v1725_v62 = vld [vmem:[%s2117_s9 + $0x6c] ss:$16 sps:$4 sm:$0xff]  }
 0x133   : > { %1168 = vmatprep.mubr.bf16.mxu1 %v304_v33  ;;  %v1728_v63 = vld [vmem:[%s2117_s9 + $0x26c] ss:$16 sps:$4 sm:$0xff]   ;;  %v1747_v18 = vld [vmem:[%s2117_s9 + $0x1e8] ss:$16 sps:$4 sm:$0xff]  }
 0x134   : > { %1112 = vmatpush2.bf16.msra.mxu0 %v1654_v0  ;;  %v1723_v0 = vld [vmem:[%s2117_s9 + $0x68] ss:$16 sps:$4 sm:$0xff]   ;;  %v1755_v20 = vld [vmem:[%s2117_s9 + $0x1cc] ss:$16 sps:$4 sm:$0xff]  }
 0x135   : > { %1153 = vmatpush2.bf16.msra.mxu1 %v1655_v1  ;;  %1113 = vmatprep.subr.bf16.mxu0 %v1656_v5  ;;  %v1726_v1 = vld [vmem:[%s2117_s9 + $0x268] ss:$16 sps:$4 sm:$0xff]   ;;  %v1758_v21 = vld [vmem:[%s2117_s9 + $0x3cc] ss:$16 sps:$4 sm:$0xff]  }
 0x136   : > { %1154 = vmatprep.subr.bf16.mxu1 %v1658_v6  ;;  %v1732_v5 = vld [vmem:[%s2117_s9 + $0x248] ss:$16 sps:$4 sm:$0xff]   ;;  %v1737_v6 = vld [vmem:[%s2117_s9 + $0x2c] ss:$16 sps:$4 sm:$0xff]  }
 0x137   : > { %v1764_v25 = vld [vmem:[%s2117_s9 + $0x3ac] ss:$16 sps:$4 sm:$0xff]   ;;  %v1759_v26 = vld [vmem:[%s2117_s9 + $0x1a8] ss:$16 sps:$4 sm:$0xff]  }
 0x138   : > { %1114 = vmatpush2.bf16.msra.mxu0 %v1660_v7  ;;  %v1740_v7 = vld [vmem:[%s2117_s9 + $0x22c] ss:$16 sps:$4 sm:$0xff]  }
 0x139   : > { %1155 = vmatpush2.bf16.msra.mxu1 %v1661_v10  ;;  %1115 = vmatprep.subr.bf16.mxu0 %v1662_v11  ;;  %v1738_v10 = vld [vmem:[%s2117_s9 + $0x228] ss:$16 sps:$4 sm:$0xff]   ;;  %v1743_v11 = vld [vmem:[%s2117_s9 + $0xc] ss:$16 sps:$4 sm:$0xff]  }
 0x13a   : > { %1156 = vmatprep.subr.bf16.mxu1 %v1664_v12  ;;  %v1746_v12 = vld [vmem:[%s2117_s9 + $0x20c] ss:$16 sps:$4 sm:$0xff]  }
 0x13b   : > { %v1770_v29 = vld [vmem:[%s2117_s9 + $0x38c] ss:$16 sps:$4 sm:$0xff]  }
 0x13c   : > { %1116 = vmatpush2.bf16.msra.mxu0 %v1666_v13  ;;  %v1741_v13 = vld [vmem:[%s2117_s9 + $0x8] ss:$16 sps:$4 sm:$0xff]  }
 0x13d   : > { %1157 = vmatpush2.bf16.msra.mxu1 %v1667_v14  ;;  %1117 = vmatprep.subr.bf16.mxu0 %v1668_v16  ;;  %v1744_v14 = vld [vmem:[%s2117_s9 + $0x208] ss:$16 sps:$4 sm:$0xff]   ;;  %v1749_v16 = vld [vmem:[%s2117_s9 + $0x1ec] ss:$16 sps:$4 sm:$0xff]  }
 0x13e   : > { %1158 = vmatprep.subr.bf16.mxu1 %v1670_v17  ;;  %v1752_v17 = vld [vmem:[%s2117_s9 + $0x3ec] ss:$16 sps:$4 sm:$0xff]  }
 0x140   : > { %1118 = vmatpush2.bf16.msra.mxu0 %v1672_v19  ;;  %v1750_v19 = vld [vmem:[%s2117_s9 + $0x3e8] ss:$16 sps:$4 sm:$0xff]  }
 0x141   : > { %1159 = vmatpush2.bf16.msra.mxu1 %v1673_v22  ;;  %1119 = vmatprep.subr.bf16.mxu0 %v1674_v23  ;;  %v1753_v22 = vld [vmem:[%s2117_s9 + $0x1c8] ss:$16 sps:$4 sm:$0xff]  }
 0x142   : > { %1160 = vmatprep.subr.bf16.mxu1 %v1676_v24  ;;  %v1756_v23 = vld [vmem:[%s2117_s9 + $0x3c8] ss:$16 sps:$4 sm:$0xff]   ;;  %v1761_v24 = vld [vmem:[%s2117_s9 + $0x1ac] ss:$16 sps:$4 sm:$0xff]  }
 0x144   : > { %1120 = vmatpush2.bf16.msra.mxu0 %v1678_v27  ;;  %v1762_v27 = vld [vmem:[%s2117_s9 + $0x3a8] ss:$16 sps:$4 sm:$0xff]  }
 0x145   : > { %1161 = vmatpush2.bf16.msra.mxu1 %v1679_v30  ;;  %1121 = vmatprep.subr.bf16.mxu0 %v1680_v31  ;;  %v1765_v30 = vld [vmem:[%s2117_s9 + $0x188] ss:$16 sps:$4 sm:$0xff]  }
 0x146   : > { %1162 = vmatprep.subr.bf16.mxu1 %v1682_v32  ;;  %v1768_v31 = vld [vmem:[%s2117_s9 + $0x388] ss:$16 sps:$4 sm:$0xff]   ;;  %v1773_v32 = vld [vmem:[%s2117_s9 + $0x16c] ss:$16 sps:$4 sm:$0xff]  }
 0x148   : > { %1122 = vmatpush2.bf16.msra.mxu0 %v1684_v34  ;;  %v1771_v34 = vld [vmem:[%s2117_s9 + $0x168] ss:$16 sps:$4 sm:$0xff]  }
 0x149   : > { %1163 = vmatpush2.bf16.msra.mxu1 %v1685_v35  ;;  %1123 = vmatprep.subr.bf16.mxu0 %v1686_v36  ;;  %v1774_v35 = vld [vmem:[%s2117_s9 + $0x368] ss:$16 sps:$4 sm:$0xff]   ;;  %v1779_v36 = vld [vmem:[%s2117_s9 + $0x14c] ss:$16 sps:$4 sm:$0xff]  }
 0x14a   : > { %1164 = vmatprep.subr.bf16.mxu1 %v1688_v37  ;;  %v1782_v37 = vld [vmem:[%s2117_s9 + $0x34c] ss:$16 sps:$4 sm:$0xff]  }
 0x14c   : > { %1124 = vmatpush2.bf16.msra.mxu0 %v1690_v38  ;;  %v1777_v38 = vld [vmem:[%s2117_s9 + $0x148] ss:$16 sps:$4 sm:$0xff]  }
 0x14d   : > { %1165 = vmatpush2.bf16.msra.mxu1 %v1691_v39  ;;  %1125 = vmatprep.subr.bf16.mxu0 %v1692_v40  ;;  %v1780_v39 = vld [vmem:[%s2117_s9 + $0x348] ss:$16 sps:$4 sm:$0xff]   ;;  %v1785_v40 = vld [vmem:[%s2117_s9 + $0x12c] ss:$16 sps:$4 sm:$0xff]  }
 0x14e   : > { %1166 = vmatprep.subr.bf16.mxu1 %v1694_v41  ;;  %v1788_v41 = vld [vmem:[%s2117_s9 + $0x32c] ss:$16 sps:$4 sm:$0xff]  }
 0x150   : > { %1126 = vmatpush2.bf16.msra.mxu0 %v1696_v42  ;;  %v1783_v42 = vld [vmem:[%s2117_s9 + $0x128] ss:$16 sps:$4 sm:$0xff]  }
 0x151   : > { %1167 = vmatpush2.bf16.msra.mxu1 %v1697_v43  ;;  %1177 = vmatprep.subr.bf16.mxu0 %v1701_v44  ;;  %v1786_v43 = vld [vmem:[%s2117_s9 + $0x328] ss:$16 sps:$4 sm:$0xff]   ;;  %v1791_v44 = vld [vmem:[%s2117_s9 + $0x10c] ss:$16 sps:$4 sm:$0xff]  }
 0x152   : > { %1218 = vmatprep.subr.bf16.mxu1 %v1704_v45  ;;  %v1794_v45 = vld [vmem:[%s2117_s9 + $0x30c] ss:$16 sps:$4 sm:$0xff]  }
 0x153   : > { %1128 = vmatmul.mubr.bf16.vlgmr.msra.gmra.mxu0 %v2201_v46 }
 0x154   : > { %1169 = vmatmul.mubr.bf16.vlgmr.msra.gmra.mxu1 %v2203_v47  ;;  %1178 = vmatpush1.bf16.msra.mxu0 %v1699_v48  ;;  %v1789_v48 = vld [vmem:[%s2117_s9 + $0x108] ss:$16 sps:$4 sm:$0xff]  }
 0x155   : > { %1219 = vmatpush1.bf16.msra.mxu1 %v1702_v49  ;;  %1179 = vmatprep.subr.bf16.mxu0 %v1707_v50  ;;  %v1792_v49 = vld [vmem:[%s2117_s9 + $0x308] ss:$16 sps:$4 sm:$0xff]   ;;  %v437_v50 = vsub.s32 0, %v2167_v9 }
 0x156   : > { %1220 = vmatprep.subr.bf16.mxu1 %v1710_v51  ;;  %1209 = vmatprep.mubr.bf16.mxu0 %v302_v28  ;;  %v1767_v28 = vld [vmem:[%s2117_s9 + $0x18c] ss:$16 sps:$4 sm:$0xff]   ;;  %v433_v51 = vld [vmem:[%s202_s25] sm:$0xf] }
 0x157   : > { %1250 = vmatprep.mubr.bf16.mxu1 %v304_v33  ;;  %v1776_v33 = vld [vmem:[%s2117_s9 + $0x36c] ss:$16 sps:$4 sm:$0xff]  }
 0x158   : > { %1180 = vmatpush1.bf16.msra.mxu0 %v1705_v52  ;;  %v441_v52 = vsub.s32 1, %v2167_v9 }
 0x159   : > { %1221 = vmatpush1.bf16.msra.mxu1 %v1708_v53  ;;  %1181 = vmatprep.subr.bf16.mxu0 %v1713_v54  ;;  %v438_v53 = vrot.slane %v433_v51, %v437_v50 }
 0x15a   : > { %1222 = vmatprep.subr.bf16.mxu1 %v1716_v55  ;;  %v442_v54 = vrot.slane %v433_v51, %v441_v52 }
 0x15c   : > { %1182 = vmatpush1.bf16.msra.mxu0 %v1711_v56 }
 0x15d   : > { %1223 = vmatpush1.bf16.msra.mxu1 %v1714_v57  ;;  %1183 = vmatprep.subr.bf16.mxu0 %v1719_v58 }
 0x15e   : > { %1224 = vmatprep.subr.bf16.mxu1 %v1722_v59 }
 0x160   : > { %1184 = vmatpush1.bf16.msra.mxu0 %v1717_v60 }
 0x161   : > { %1225 = vmatpush1.bf16.msra.mxu1 %v1720_v61  ;;  %1185 = vmatprep.subr.bf16.mxu0 %v1725_v62 }
 0x162   : > { %1226 = vmatprep.subr.bf16.mxu1 %v1728_v63 }
 0x164   : > { %1186 = vmatpush1.bf16.msra.mxu0 %v1723_v0 }
 0x165   : > { %1227 = vmatpush1.bf16.msra.mxu1 %v1726_v1  ;;  %1187 = vmatprep.subr.bf16.mxu0 %v1731_v2 }
 0x166   : > { %1228 = vmatprep.subr.bf16.mxu1 %v1734_v3 }
 0x168   : > { %1188 = vmatpush1.bf16.msra.mxu0 %v1729_v4 }
 0x169   : > { %1229 = vmatpush1.bf16.msra.mxu1 %v1732_v5  ;;  %1189 = vmatprep.subr.bf16.mxu0 %v1737_v6  ;;  %v445_v6 = vsub.s32 2, %v2167_v9 }
 0x16a   : > { %1230 = vmatprep.subr.bf16.mxu1 %v1740_v7  ;;  %v449_v7 = vsub.s32 3, %v2167_v9 }
 0x16c   : > { %1190 = vmatpush1.bf16.msra.mxu0 %v1735_v8  ;;  %v446_v8 = vrot.slane %v433_v51, %v445_v6 }
 0x16d   : > { %1231 = vmatpush1.bf16.msra.mxu1 %v1738_v10  ;;  %1191 = vmatprep.subr.bf16.mxu0 %v1743_v11  ;;  %v450_v10 = vrot.slane %v433_v51, %v449_v7 }
 0x16e   : > { %1232 = vmatprep.subr.bf16.mxu1 %v1746_v12 }
 0x170   : > { %1192 = vmatpush1.bf16.msra.mxu0 %v1741_v13 }
 0x171   : > { %1233 = vmatpush1.bf16.msra.mxu1 %v1744_v14  ;;  %1193 = vmatprep.subr.bf16.mxu0 %v1749_v16 }
 0x172   : > { %1234 = vmatprep.subr.bf16.mxu1 %v1752_v17 }
 0x174   : > { %1194 = vmatpush2.bf16.msra.mxu0 %v1747_v18 }
 0x175   : > { %1235 = vmatpush2.bf16.msra.mxu1 %v1750_v19  ;;  %1195 = vmatprep.subr.bf16.mxu0 %v1755_v20 }
 0x176   : > { %1236 = vmatprep.subr.bf16.mxu1 %v1758_v21 }
 0x178   : > { %1196 = vmatpush2.bf16.msra.mxu0 %v1753_v22 }
 0x179   : > { %1237 = vmatpush2.bf16.msra.mxu1 %v1756_v23  ;;  %1197 = vmatprep.subr.bf16.mxu0 %v1761_v24 }
 0x17a   : > { %1238 = vmatprep.subr.bf16.mxu1 %v1764_v25 }
 0x17c   : > { %1198 = vmatpush2.bf16.msra.mxu0 %v1759_v26 }
 0x17d   : > { %1239 = vmatpush2.bf16.msra.mxu1 %v1762_v27  ;;  %1199 = vmatprep.subr.bf16.mxu0 %v1767_v28 }
 0x17e   : > { %1240 = vmatprep.subr.bf16.mxu1 %v1770_v29 }
 0x180   : > { %1200 = vmatpush2.bf16.msra.mxu0 %v1765_v30 }
 0x181   : > { %1241 = vmatpush2.bf16.msra.mxu1 %v1768_v31  ;;  %1201 = vmatprep.subr.bf16.mxu0 %v1773_v32 }
 0x182   : > { %1242 = vmatprep.subr.bf16.mxu1 %v1776_v33 }
 0x184   : > { %1202 = vmatpush2.bf16.msra.mxu0 %v1771_v34 }
 0x185   : > { %1243 = vmatpush2.bf16.msra.mxu1 %v1774_v35  ;;  %1203 = vmatprep.subr.bf16.mxu0 %v1779_v36 }
 0x186   : > { %1244 = vmatprep.subr.bf16.mxu1 %v1782_v37 }
 0x188   : > { %1204 = vmatpush2.bf16.msra.mxu0 %v1777_v38 }
 0x189   : > { %1245 = vmatpush2.bf16.msra.mxu1 %v1780_v39  ;;  %1205 = vmatprep.subr.bf16.mxu0 %v1785_v40 }
 0x18a   : > { %1246 = vmatprep.subr.bf16.mxu1 %v1788_v41 }
 0x18c   : > { %1206 = vmatpush2.bf16.msra.mxu0 %v1783_v42 }
 0x18d   : > { %1247 = vmatpush2.bf16.msra.mxu1 %v1786_v43  ;;  %1207 = vmatprep.subr.bf16.mxu0 %v1791_v44 }
 0x18e   : > { %1248 = vmatprep.subr.bf16.mxu1 %v1794_v45 }
 0x190   : > { %1208 = vmatpush2.bf16.msra.mxu0 %v1789_v48 }
 0x191   : > { %1249 = vmatpush2.bf16.msra.mxu1 %v1792_v49 }
 0x193   : > { %1210 = vmatmul.mubr.bf16.vlgmr.msra.gmra.mxu0 %v2201_v46 }
 0x194   : > { %1251 = vmatmul.mubr.bf16.vlgmr.msra.gmra.mxu1 %v2203_v47 }
 0x213   : > { %v1129_v55 = vpop.f32.mrf.mxu0 }
 0x214   : > { %v1170_v56 = vpop.f32.mrf.mxu1  ;;  %v1130_v57 = vadd.f32 %v1129_v55, %v438_v53 }
 0x215   : > { %v1131_v58 = vpop.f32.mrf.mxu0 }
 0x216   : > { %v1172_v59 = vpop.f32.mrf.mxu1  ;;  %v1171_v60 = vadd.f32 %v1170_v56, %v1130_v57  ;;  %v1132_v61 = vadd.f32 %v1131_v58, %v442_v54 }
 0x217   : > { %v1133_v62 = vpop.f32.mrf.mxu0 }
 0x218   : > { %v1174_v63 = vpop.f32.mrf.mxu1  ;;  %v1263_v46 = vmul.f32 0.2, %v1171_v60  ;;  %v1173_v0 = vadd.f32 %v1172_v59, %v1132_v61  ;;  %vm1259_vm1 = vcmp.ge.f32.partialorder %v1171_v60, 0.0 }
 0x219   : > { %v1134_v47 = vpop.f32.mrf.mxu0 }
 0x21a   : > { %v1175_v1 = vpop.f32.mrf.mxu1  ;;  %vm1260_vm2 = vcmp.ge.f32.partialorder %v1173_v0, 0.0  ;;  %v1264_v2 = vmul.f32 0.2, %v1173_v0  ;;  %v1267_v3 = vsel %vm1259_vm1, %v1171_v60, %v1263_v46 }
 0x21c   : > { %v1268_v4 = vsel %vm1260_vm2, %v1173_v0, %v1264_v2 }
 0x21d   : > { %v1275_v5 = vcombine.low %v1267_v3, %v1268_v4 }
 0x21f   : > { %v1283_v28 = vrot.slane %v1275_v5, %v2175_v15 }
 0x253   : > { %v1211_v11 = vpop.f32.mrf.mxu0 }
 0x254   : > { %v1252_v12 = vpop.f32.mrf.mxu1  ;;  %v1212_v13 = vadd.f32 %v1211_v11, %v446_v8 }
 0x255   : > { %v1213_v14 = vpop.f32.mrf.mxu0 }
 0x256   : > { %v1254_v16 = vpop.f32.mrf.mxu1  ;;  %v1253_v17 = vadd.f32 %v1252_v12, %v1212_v13  ;;  %v1214_v18 = vadd.f32 %v1213_v14, %v450_v10 }
 0x257   : > { %v1215_v19 = vpop.f32.mrf.mxu0 }
 0x258   : > { %v1256_v20 = vpop.f32.mrf.mxu1  ;;  %v1265_v21 = vmul.f32 0.2, %v1253_v17  ;;  %v1255_v22 = vadd.f32 %v1254_v16, %v1214_v18  ;;  %vm1261_vm3 = vcmp.ge.f32.partialorder %v1253_v17, 0.0 }
 0x259   : > { %v1216_v23 = vpop.f32.mrf.mxu0 }
 0x25a   : > { %v1257_v24 = vpop.f32.mrf.mxu1  ;;  %vm1262_vm4 = vcmp.ge.f32.partialorder %v1255_v22, 0.0  ;;  %v1266_v9 = vmul.f32 0.2, %v1255_v22  ;;  %v1269_v25 = vsel %vm1261_vm3, %v1253_v17, %v1265_v21 }
 0x25c   : > { %v1270_v26 = vsel %vm1262_vm4, %v1255_v22, %v1266_v9 }
 0x25d   : > { %v1276_v27 = vcombine.low %v1269_v25, %v1270_v26 }
 0x25f   : > { %v1290_v29 = vrot.slane %v1276_v27, %v2175_v15 }
 0x261   : > { %v1291_v30 = vcombine.low %v1283_v28, %v1290_v29 }
 0x263   : > { %1293 = vst [vmem:[#allocation2] sm:$0xff] %v1291_v30  ;;  %1294 = vst [vmem:[#allocation9] sm:$0xff] %v1291_v30 }
 0x264   : > { %1890 = shalt.err (!%p1887_p12)
}
 0x265   : > { %1542 = dma.vmem_to_hbm [thread:$0]  (%p1559_p1), %s1303_s5, 128, %s2307_s3, [#allocation5]  }
 0x266   : > { %1926 = dma.done.wait (%p1559_p1), [#allocation5], 128  }
 0x267   : > { %1928 = vsyncadd (%p1559_p1), [#allocation5], 4294967168 }
 0x268 PF: > { %p15_p2 = scmp.ge.s32.totalorder %s1995_s16, 10   ;;  %s2319_s12 = smov %s1935_s13 }
 0x269   : > { %s2320_s13 = smov %s1939_s14  ;;  %s2321_s14 = smov %s2005_s19 }
 0x26a   : > { %s2322_s15 = smov %s1995_s16  ;;  %17 = sbr.rel (!%p15_p2) target bundleno = 5 (0x5), region = 89 }
 0x26f   :  { %1315 = vsyncpa [#allocation4], 1 }
 0x270   :  { %1317 = vsyncpa [#allocation4 + $0x1], 1 }
 0x271   :  { %1318 = vsyncpa [#allocation7], 1 }
 0x272   :  { %1320 = vsyncpa [#allocation7 + $0x1], 1 }
 0x273   :  { %1321 = vsyncpa [#allocation5], 1 }
 0x274   :  { %1323 = vsyncpa [#allocation5 + $0x1], 1 }

</bundles_post_ra>
